<compile_context>
chip_gen: v6e
topology: v6e:2x2x1
jax: 0.10.0
libtpu: 0.0.40
codegen_flags: <defaults>
</compile_context>

<pallas_src>
import functools

import jax
import jax.numpy as jnp
from jax import lax
from jax.experimental import pallas as pl
from jax.experimental.pallas import tpu as pltpu


def _rup(a, m):
    return -(-a // m) * m


_ELEMENT_OK = None


def _element_window_supported():
    """One-time probe: overlapping element-indexed lane windows via pl.Element."""
    global _ELEMENT_OK
    if _ELEMENT_OK is not None:
        return _ELEMENT_OK
    try:
        x = jnp.arange(2 * 8 * 384, dtype=jnp.float32).reshape(2, 8, 384)

        def ker(x_ref, o_ref):
            o_ref[0] = x_ref[...]

        out = pl.pallas_call(
            ker,
            out_shape=jax.ShapeDtypeStruct((2, 2, 8, 256), jnp.float32),
            grid=(2, 2),
            in_specs=[pl.BlockSpec((1, 8, pl.Element(256)),
                                   lambda i, j: (i, 0, j * 128))],
            out_specs=pl.BlockSpec((1, 1, 8, 256), lambda i, j: (i, j, 0, 0)),
        )(x)
        out = jax.block_until_ready(out)
        ok = True
        for i in range(2):
            for j in range(2):
                ok = ok and bool(jnp.array_equal(out[i, j],
                                                 x[i, :, j * 128:j * 128 + 256]))
        _ELEMENT_OK = ok
    except Exception:
        _ELEMENT_OK = False
    return _ELEMENT_OK


def _flatten_taps(w, c_pad, dtype):
    """(C_out, C_src, K) -> (C_out, K*c_pad): taps stacked along the contraction,
    each tap's C_src rows zero-padded to c_pad (a sublane multiple)."""
    c_out, c_src, k = w.shape
    wt = jnp.transpose(w, (2, 1, 0))                       # (K, C_src, C_out)
    wt = jnp.pad(wt, ((0, 0), (0, c_pad - c_src), (0, 0)))  # (K, c_pad, C_out)
    return jnp.transpose(wt.reshape(k * c_pad, c_out)).astype(dtype)


def _temporal_block_kernel(*refs, dilation, kernel_size, padding, hist,
                           has_downsample, mode, fused, c_in_pad, c_out_pad):
    # Ref order: [halo (legacy only)], x, w1, b1, w2, b2, [wd, bd], out
    refs = list(refs)
    halo_ref = refs.pop(0) if mode == "legacy" else None
    x_ref = refs.pop(0)
    w1_ref, b1_ref, w2_ref, b2_ref = refs[:4]
    refs = refs[4:]
    if has_downsample:
        wd_ref, bd_ref = refs[:2]
        refs = refs[2:]
    (o_ref,) = refs

    K, d, p = kernel_size, dilation, padding
    C_out, Lt = o_ref.shape[1], o_ref.shape[2]
    W1 = Lt + p                        # conv1 recomputed over local times [-p, Lt)
    j = pl.program_id(1)               # time-tile index
    cdtype = x_ref.dtype

    if mode == "legacy":
        # Fallback path: halo block + in-kernel stitch (original scheme).
        x_cur = x_ref[0]
        if p > 0:
            hp = halo_ref.shape[2]
            halo = halo_ref[0][:, hp - 2 * p:]
            halo = jnp.where(j > 0, halo, jnp.zeros_like(halo))
            x_ext = jnp.concatenate([halo, x_cur], axis=1)   # (C_in, 2p + Lt)
            hpad = 2 * p
        else:
            x_ext, hpad = x_cur, 0
    else:
        # Overlapping window delivered directly by the BlockSpec DMA.
        x_ext = x_ref[0]               # (C_in, hist + Lt)
        hpad = hist
        x_cur = x_ext[:, hpad:] if hpad else x_ext           # lane-aligned slice

    def conv(w_ref, b_ref, src, rows_pad, start0, width):
        """Dilated conv as matmul(s): src columns start0 + k*d + [0, width)."""
        b = b_ref[...]                 # (C_out, 1) f32
        if fused:
            # One deep-contraction matmul; per-tap blocks sublane-padded.
            c_src = src.shape[0]
            pieces = []
            for k in range(K):
                pieces.append(src[:, start0 + k * d: start0 + k * d + width])
                if rows_pad > c_src:
                    pieces.append(jnp.zeros((rows_pad - c_src, width), src.dtype))
            stk = pieces[0] if len(pieces) == 1 else jnp.concatenate(pieces, axis=0)
            return jnp.dot(w_ref[...], stk, preferred_element_type=jnp.float32) + b
        # Wide channels: K per-tap matmuls, f32 accumulation, no staging stack.
        acc = jnp.dot(w_ref[0], src[:, start0: start0 + width],
                      preferred_element_type=jnp.float32) + b
        for k in range(1, K):
            acc = acc + jnp.dot(w_ref[k],
                                src[:, start0 + k * d: start0 + k * d + width],
                                preferred_element_type=jnp.float32)
        return acc

    # ---- conv1 (causal, dilated) over [-p, Lt); ReLU ---------------------------
    h1 = jnp.maximum(conv(w1_ref, b1_ref, x_ext, c_in_pad, hpad - 2 * p, W1), 0.0)
    if p > 0:
        # conv2's input at global time < 0 is ZERO padding (not conv1-of-padded-x);
        # only the first time tile contains such columns.
        col = lax.broadcasted_iota(jnp.int32, (1, W1), 1)
        h1 = jnp.where((j > 0) | (col >= p), h1, 0.0)
    h1 = h1.astype(cdtype)             # MXU operand dtype
    # dropout1: identity (eval mode)

    # ---- conv2 (causal, dilated) over [0, Lt); ReLU ----------------------------
    h2 = jnp.maximum(conv(w2_ref, b2_ref, h1, c_out_pad, 0, Lt), 0.0)
    # dropout2: identity (eval mode)

    # ---- residual (1x1 conv or identity) + final ReLU --------------------------
    if has_downsample:
        res = jnp.dot(wd_ref[...], x_cur, preferred_element_type=jnp.float32) \
            + bd_ref[...]
    else:
        res = x_cur.astype(jnp.float32)
    o_ref[0] = jnp.maximum(h2 + res, 0.0).astype(o_ref.dtype)


def temporal_block(x, w1, b1, w2, b2, wd=None, bd=None, *, dilation, padding,
                   l_tile=None, vmem_limit_bytes=None):
    """Fused TemporalBlock forward.

    x : (N, C_in, L)           activations (bf16 recommended; dtype preserved)
    w1: (C_out, C_in, K)       conv1 EFFECTIVE weight (weight_norm already applied)
    b1: (C_out,)
    w2: (C_out, C_out, K)      conv2 effective weight
    b2: (C_out,)
    wd: (C_out, C_in)[,1]|None 1x1 downsample weight (None iff C_in == C_out)
    bd: (C_out,) | None
    Returns (N, C_out, L) in x.dtype.
    """
    N, C_in, L = x.shape
    C_out, _, K = w1.shape
    p, d = int(padding), int(dilation)
    if p != (K - 1) * d:
        raise ValueError("TemporalBlock requires padding == (kernel_size-1)*dilation")
    has_downsample = wd is not None
    if not has_downsample and C_in != C_out:
        raise ValueError("downsample weights required when n_inputs != n_outputs")
    if has_downsample and wd.ndim == 3:
        wd = wd[..., 0]
    cdtype = x.dtype
    itemsize = jnp.dtype(cdtype).itemsize
    pad_unit = 8 * max(1, 4 // itemsize)          # 8 (f32), 16 (bf16), 32 (int8)
    fused = (K > 1) and (max(C_in, C_out) < 128)  # fuse taps only for narrow C
    c_in_pad = _rup(C_in, pad_unit)
    c_out_pad = _rup(C_out, pad_unit)

    # ---- hardware-aware defaults (v7x: 64 MiB VMEM, v5e/v6e: 128 MiB) ---------
    try:
        vmem_cap = int(pltpu.get_tpu_info().vmem_capacity_bytes)
    except Exception:
        vmem_cap = None
    if vmem_limit_bytes is None:
        vmem_limit_bytes = (min(int(vmem_cap * 0.85), 112 * 2 ** 20)
                            if vmem_cap else 48 * 2 ** 20)
    vmem_limit_bytes = int(vmem_limit_bytes)
    if l_tile is None:
        l_tile = 512 if (vmem_cap is not None and vmem_cap <= 64 * 2 ** 20) else 1024

    HP = _rup(2 * p, 128) if p > 0 else 0         # lane-aligned causal history

    def _vmem_est(lt):
        w1w = lt + p
        wbytes = 2 * itemsize * C_out * (K * C_in + K * C_out
                                         + (C_in if has_downsample else 0))
        io = 2 * itemsize * (C_in * (HP + lt) + C_out * lt)
        tmp = itemsize * K * (C_in * w1w + C_out * lt) + 4 * C_out * (w1w + 2 * lt)
        return wbytes + io + tmp

    # ---- time tiling: lane-dense Lt (multiple of 128), shrink-to-fit ----------
    Lt = _rup(max(min(int(l_tile), L), 2 * p, 1), 128)
    lt_min = _rup(max(2 * p, 1), 128)
    while Lt > lt_min and _vmem_est(Lt) > 0.7 * vmem_limit_bytes:
        nxt = max(lt_min, _rup(Lt // 2, 128))
        if nxt >= Lt:
            break
        Lt = nxt
    if Lt >= L:
        Lt, num_tiles = _rup(L, 128), 1
    else:
        num_tiles = -(-L // Lt)
    L_pad = num_tiles * Lt

    # ---- choose x delivery mode ------------------------------------------------
    if p == 0 or num_tiles == 1 or _element_window_supported():
        mode = "window"
    else:
        mode = "legacy"
    hist = HP if (mode == "window" and p > 0) else 0

    inputs, in_specs = [], []
    if mode == "window":
        # x left-padded by `hist` zeros (causal history for tile 0) and right-
        # padded to the tiled length; one pad op covers both.
        if hist == 0 and L_pad == L:
            x_in = x
        else:
            x_in = jnp.pad(x, ((0, 0), (0, 0), (hist, L_pad - L)))
        if num_tiles == 1:
            x_spec = pl.BlockSpec((1, C_in, hist + Lt), lambda i, j: (i, 0, 0))
        elif hist == 0:
            x_spec = pl.BlockSpec((1, C_in, Lt), lambda i, j: (i, 0, j))
        else:
            # Overlapping window: element-indexed lane offset j*Lt, width hist+Lt.
            x_spec = pl.BlockSpec((1, C_in, pl.Element(hist + Lt)),
                                  lambda i, j: (i, 0, j * Lt))
        inputs.append(x_in)
        in_specs.append(x_spec)
    else:
        # Legacy fallback: halo block (last hp columns of the previous tile).
        x_in = x if L_pad == L else jnp.pad(x, ((0, 0), (0, 0), (0, L_pad - L)))
        hp = 128
        while hp < 2 * p or Lt % hp:
            hp += 128
        stride_blocks = Lt // hp
        inputs.append(x_in)
        in_specs.append(pl.BlockSpec(
            (1, C_in, hp),
            lambda i, j: (i, 0, jnp.maximum(j * stride_blocks - 1, 0))))
        inputs.append(x_in)
        in_specs.append(pl.BlockSpec((1, C_in, Lt), lambda i, j: (i, 0, j)))

    b1c = b1.reshape(C_out, 1).astype(jnp.float32)
    b2c = b2.reshape(C_out, 1).astype(jnp.float32)
    if fused:
        inputs += [_flatten_taps(w1, c_in_pad, cdtype), b1c,
                   _flatten_taps(w2, c_out_pad, cdtype), b2c]
        in_specs += [pl.BlockSpec((C_out, K * c_in_pad), lambda i, j: (0, 0)),
                     pl.BlockSpec((C_out, 1), lambda i, j: (0, 0)),
                     pl.BlockSpec((C_out, K * c_out_pad), lambda i, j: (0, 0)),
                     pl.BlockSpec((C_out, 1), lambda i, j: (0, 0))]
    else:
        inputs += [jnp.transpose(w1, (2, 0, 1)).astype(cdtype), b1c,
                   jnp.transpose(w2, (2, 0, 1)).astype(cdtype), b2c]
        in_specs += [pl.BlockSpec((K, C_out, C_in), lambda i, j: (0, 0, 0)),
                     pl.BlockSpec((C_out, 1), lambda i, j: (0, 0)),
                     pl.BlockSpec((K, C_out, C_out), lambda i, j: (0, 0, 0)),
                     pl.BlockSpec((C_out, 1), lambda i, j: (0, 0))]
    if has_downsample:
        inputs += [wd.astype(cdtype), bd.reshape(C_out, 1).astype(jnp.float32)]
        in_specs += [pl.BlockSpec((C_out, C_in), lambda i, j: (0, 0)),
                     pl.BlockSpec((C_out, 1), lambda i, j: (0, 0))]

    kernel = functools.partial(
        _temporal_block_kernel, dilation=d, kernel_size=K, padding=p, hist=hist,
        has_downsample=has_downsample, mode=mode, fused=fused,
        c_in_pad=c_in_pad, c_out_pad=c_out_pad)

    out = pl.pallas_call(
        kernel,
        out_shape=jax.ShapeDtypeStruct((N, C_out, L_pad), cdtype),
        grid=(N, num_tiles),
        in_specs=in_specs,
        out_specs=pl.BlockSpec((1, C_out, Lt), lambda i, j: (i, 0, j)),
        compiler_params=pltpu.CompilerParams(
            dimension_semantics=("parallel", "parallel"),
            vmem_limit_bytes=vmem_limit_bytes),
    )(*inputs)

    return out if L_pad == L else out[:, :, :L]


def _weight_norm(v):
    """Effective weight of torch.nn.utils.weight_norm at init: g = ||v|| (dim=0),
    so the effective weight equals v; kept to document the reparameterization."""
    norm = jnp.sqrt(jnp.sum(v * v, axis=(1, 2), keepdims=True))
    return norm * v / norm


def _reference(x, w1, b1, w2, b2, wd, bd, dilation, padding):
    """Pure-JAX reference of the TemporalBlock forward (f32 accumulation)."""
    N, C_in, L = x.shape
    K = w1.shape[2]
    p = padding
    f32 = jnp.float32

    def causal_conv(inp, w, b):
        inp_pad = jnp.pad(inp, ((0, 0), (0, 0), (p, 0))).astype(f32)
        out = jnp.zeros((N, w.shape[0], L), f32)
        for k in range(K):
            out = out + jnp.einsum("oc,ncl->nol", w[:, :, k].astype(f32),
                                   inp_pad[:, :, k * dilation:k * dilation + L])
        return out + b.astype(f32)[None, :, None]

    h1 = jax.nn.relu(causal_conv(x, w1, b1)).astype(x.dtype)
    h2 = jax.nn.relu(causal_conv(h1, w2, b2))
    if wd is None:
        res = x.astype(f32)
    else:
        res = (jnp.einsum("oc,ncl->nol", wd.astype(f32), x.astype(f32))
               + bd.astype(f32)[None, :, None])
    return jax.nn.relu(h2 + res)


if __name__ == "__main__":
    key = jax.random.PRNGKey(0)

    def make_params(k, c_in, c_out, ksz, with_downsample):
        k1, kb1, k2, kb2, kd, kbd = jax.random.split(k, 6)
        w1 = _weight_norm(0.01 * jax.random.normal(k1, (c_out, c_in, ksz), jnp.float32))
        w2 = _weight_norm(0.01 * jax.random.normal(k2, (c_out, c_out, ksz), jnp.float32))
        b1 = 0.01 * jax.random.normal(kb1, (c_out,), jnp.float32)
        b2 = 0.01 * jax.random.normal(kb2, (c_out,), jnp.float32)
        if with_downsample:
            wd = 0.01 * jax.random.normal(kd, (c_out, c_in), jnp.float32)
            bd = 0.01 * jax.random.normal(kbd, (c_out,), jnp.float32)
        else:
            wd = bd = None
        return w1, b1, w2, b2, wd, bd

    # -- test 1: downsample residual, f32, single lane-dense tile, fused taps.
    N, C_in, C_out, K, L, d = 2, 4, 8, 3, 16, 1
    p = (K - 1) * d
    kx, kp, key = jax.random.split(key, 3)
    x = jax.random.normal(kx, (N, C_in, L), jnp.float32)
    w1, b1, w2, b2, wd, bd = make_params(kp, C_in, C_out, K, True)
    out = jax.block_until_ready(
        temporal_block(x, w1, b1, w2, b2, wd, bd, dilation=d, padding=p))
    ref = _reference(x, w1, b1, w2, b2, wd, bd, d, p)
    assert out.shape == (N, C_out, L) and out.dtype == x.dtype
    assert jnp.allclose(out.astype(jnp.float32), ref, atol=1e-3, rtol=1e-2), \
        "test 1 mismatch vs JAX reference"

    # -- test 2: identity residual, bf16, dilation 2, 3 time tiles of 128 with an
    #            overlapping element-indexed causal window, fused sublane-padded taps.
    N2, C2, K2, L2, d2 = 1, 8, 3, 384, 2
    p2 = (K2 - 1) * d2
    kx2, kp2, key = jax.random.split(key, 3)
    x2 = jax.random.normal(kx2, (N2, C2, L2), jnp.float32).astype(jnp.bfloat16)
    w1b, b1b, w2b, b2b, _, _ = make_params(kp2, C2, C2, K2, False)
    w1b, b1b, w2b, b2b = (a.astype(jnp.bfloat16) for a in (w1b, b1b, w2b, b2b))
    out2 = jax.block_until_ready(
        temporal_block(x2, w1b, b1b, w2b, b2b, None, None,
                       dilation=d2, padding=p2, l_tile=128))
    ref2 = _reference(x2, w1b, b1b, w2b, b2b, None, None, d2, p2)
    assert out2.shape == (N2, C2, L2) and out2.dtype == jnp.bfloat16
    assert jnp.allclose(out2.astype(jnp.float32), ref2, atol=2e-3, rtol=2e-2), \
        "test 2 mismatch vs JAX reference"

    # -- test 3: wide channels -> per-tap accumulation path, bf16, downsample,
    #            non-128-multiple L padded to a lane-dense single tile.
    N3, C3i, C3o, K3, L3, d3 = 2, 128, 160, 3, 200, 2
    p3 = (K3 - 1) * d3
    kx3, kp3, key = jax.random.split(key, 3)
    x3 = jax.random.normal(kx3, (N3, C3i, L3), jnp.float32).astype(jnp.bfloat16)
    w1c, b1c, w2c, b2c, wdc, bdc = make_params(kp3, C3i, C3o, K3, True)
    w1c, b1c, w2c, b2c, wdc, bdc = (a.astype(jnp.bfloat16)
                                    for a in (w1c, b1c, w2c, b2c, wdc, bdc))
    out3 = jax.block_until_ready(
        temporal_block(x3, w1c, b1c, w2c, b2c, wdc, bdc, dilation=d3, padding=p3))
    ref3 = _reference(x3, w1c, b1c, w2c, b2c, wdc, bdc, d3, p3)
    assert out3.shape == (N3, C3o, L3) and out3.dtype == jnp.bfloat16
    assert jnp.allclose(out3.astype(jnp.float32), ref3, atol=5e-3, rtol=3e-2), \
        "test 3 mismatch vs JAX reference"

    print("KERNEL_OK")
</pallas_src>

<mosaic_0001>
module attributes {stable_mosaic.version = 11 : i64} {
  func.func @_temporal_block_kernel(%arg0: i32, %arg1: i32, %arg2: memref<1x4x256xf32, #tpu.memory_space<vmem>>, %arg3: memref<8x24xf32, #tpu.memory_space<vmem>>, %arg4: memref<8x1xf32, #tpu.memory_space<vmem>>, %arg5: memref<8x24xf32, #tpu.memory_space<vmem>>, %arg6: memref<8x1xf32, #tpu.memory_space<vmem>>, %arg7: memref<8x4xf32, #tpu.memory_space<vmem>>, %arg8: memref<8x1xf32, #tpu.memory_space<vmem>>, %arg9: memref<1x8x128xf32, #tpu.memory_space<vmem>>) attributes {dimension_semantics = [#tpu.dimension_semantics<parallel>, #tpu.dimension_semantics<parallel>], iteration_bounds = array<i64: 2, 1>, scalar_prefetch = 0 : i64, scratch_operands = 0 : i64, tpu.core_type = #tpu.core_type<tc>, window_params = [{transform_indices = @transform_0, window_bounds = array<i64: 1, 4, 256>}, {pipeline_mode = #tpu.pipeline_mode<synchronous>, transform_indices = @transform_1, window_bounds = array<i64: 8, 24>}, {pipeline_mode = #tpu.pipeline_mode<synchronous>, transform_indices = @transform_2, window_bounds = array<i64: 8, 1>}, {pipeline_mode = #tpu.pipeline_mode<synchronous>, transform_indices = @transform_3, window_bounds = array<i64: 8, 24>}, {pipeline_mode = #tpu.pipeline_mode<synchronous>, transform_indices = @transform_4, window_bounds = array<i64: 8, 1>}, {pipeline_mode = #tpu.pipeline_mode<synchronous>, transform_indices = @transform_5, window_bounds = array<i64: 8, 4>}, {pipeline_mode = #tpu.pipeline_mode<synchronous>, transform_indices = @transform_6, window_bounds = array<i64: 8, 1>}, {transform_indices = @transform_7, window_bounds = array<i64: 1, 8, 128>}]} {
    %c0 = arith.constant 0 : index
    %c0_0 = arith.constant 0 : index
    %c0_1 = arith.constant 0 : index
    %0 = vector.load %arg2[%c0, %c0_0, %c0_1] : memref<1x4x256xf32, #tpu.memory_space<vmem>>, vector<1x4x256xf32>
    %1 = vector.shape_cast %0 : vector<1x4x256xf32> to vector<4x256xf32>
    %2 = vector.extract_strided_slice %1 {offsets = [0, 128], sizes = [4, 128], strides = [1, 1]} : vector<4x256xf32> to vector<4x128xf32>
    %c0_2 = arith.constant 0 : index
    %c0_3 = arith.constant 0 : index
    %3 = vector.load %arg4[%c0_2, %c0_3] : memref<8x1xf32, #tpu.memory_space<vmem>>, vector<8x1xf32>
    %4 = vector.extract_strided_slice %1 {offsets = [0, 124], sizes = [4, 130], strides = [1, 1]} : vector<4x256xf32> to vector<4x130xf32>
    %cst = arith.constant 0.000000e+00 : f32
    %5 = vector.broadcast %cst : f32 to vector<4x130xf32>
    %6 = vector.extract_strided_slice %1 {offsets = [0, 125], sizes = [4, 130], strides = [1, 1]} : vector<4x256xf32> to vector<4x130xf32>
    %cst_4 = arith.constant 0.000000e+00 : f32
    %7 = vector.broadcast %cst_4 : f32 to vector<4x130xf32>
    %8 = vector.extract_strided_slice %1 {offsets = [0, 126], sizes = [4, 130], strides = [1, 1]} : vector<4x256xf32> to vector<4x130xf32>
    %cst_5 = arith.constant 0.000000e+00 : f32
    %9 = vector.broadcast %cst_5 : f32 to vector<4x130xf32>
    %10 = tpu.concatenate %4, %5, %6, %7, %8, %9 in 0 : vector<4x130xf32>, vector<4x130xf32>, vector<4x130xf32>, vector<4x130xf32>, vector<4x130xf32>, vector<4x130xf32> -> vector<24x130xf32>
    %c0_6 = arith.constant 0 : index
    %c0_7 = arith.constant 0 : index
    %11 = vector.load %arg3[%c0_6, %c0_7] : memref<8x24xf32, #tpu.memory_space<vmem>>, vector<8x24xf32>
    %cst_8 = arith.constant dense<0.000000e+00> : vector<8x130xf32>
    %12 = tpu.matmul %11, %10, %cst_8 {dimension_numbers = #tpu.dot_dimension_numbers<[1], [0], [0], [1], [0, 0, 1, 1], [], []>} : vector<8x24xf32>, vector<24x130xf32>, vector<8x130xf32> -> vector<8x130xf32>
    %13 = vector.broadcast %3 : vector<8x1xf32> to vector<8x130xf32>
    %14 = arith.addf %12, %13 : vector<8x130xf32>
    %cst_9 = arith.constant 0.000000e+00 : f32
    %15 = vector.broadcast %cst_9 : f32 to vector<8x130xf32>
    %16 = arith.maximumf %14, %15 : vector<8x130xf32>
    %17 = tpu.iota {dimensions = array<i32: 1>} : vector<1x130xi32>
    %c0_i32 = arith.constant 0 : i32
    %18 = arith.cmpi sgt, %arg1, %c0_i32 : i32
    %c2_i32 = arith.constant 2 : i32
    %19 = vector.broadcast %c2_i32 : i32 to vector<1x130xi32>
    %20 = arith.cmpi sge, %17, %19 : vector<1x130xi32>
    %21 = vector.broadcast %18 : i1 to vector<1x130xi1>
    %22 = arith.ori %21, %20 : vector<1x130xi1>
    %cst_10 = arith.constant 0.000000e+00 : f32
    %23 = vector.shape_cast %22 : vector<1x130xi1> to vector<1x130xi1>
    %24 = vector.broadcast %23 : vector<1x130xi1> to vector<8x130xi1>
    %25 = vector.broadcast %cst_10 : f32 to vector<8x130xf32>
    %26 = arith.select %24, %16, %25 : vector<8x130xi1>, vector<8x130xf32>
    %c0_11 = arith.constant 0 : index
    %c0_12 = arith.constant 0 : index
    %27 = vector.load %arg6[%c0_11, %c0_12] : memref<8x1xf32, #tpu.memory_space<vmem>>, vector<8x1xf32>
    %28 = vector.extract_strided_slice %26 {offsets = [0, 0], sizes = [8, 128], strides = [1, 1]} : vector<8x130xf32> to vector<8x128xf32>
    %29 = vector.extract_strided_slice %26 {offsets = [0, 1], sizes = [8, 128], strides = [1, 1]} : vector<8x130xf32> to vector<8x128xf32>
    %30 = vector.extract_strided_slice %26 {offsets = [0, 2], sizes = [8, 128], strides = [1, 1]} : vector<8x130xf32> to vector<8x128xf32>
    %31 = tpu.concatenate %28, %29, %30 in 0 : vector<8x128xf32>, vector<8x128xf32>, vector<8x128xf32> -> vector<24x128xf32>
    %c0_13 = arith.constant 0 : index
    %c0_14 = arith.constant 0 : index
    %32 = vector.load %arg5[%c0_13, %c0_14] : memref<8x24xf32, #tpu.memory_space<vmem>>, vector<8x24xf32>
    %cst_15 = arith.constant dense<0.000000e+00> : vector<8x128xf32>
    %33 = tpu.matmul %32, %31, %cst_15 {dimension_numbers = #tpu.dot_dimension_numbers<[1], [0], [0], [1], [0, 0, 1, 1], [], []>} : vector<8x24xf32>, vector<24x128xf32>, vector<8x128xf32> -> vector<8x128xf32>
    %34 = vector.broadcast %27 : vector<8x1xf32> to vector<8x128xf32>
    %35 = arith.addf %33, %34 : vector<8x128xf32>
    %cst_16 = arith.constant 0.000000e+00 : f32
    %36 = vector.broadcast %cst_16 : f32 to vector<8x128xf32>
    %37 = arith.maximumf %35, %36 : vector<8x128xf32>
    %c0_17 = arith.constant 0 : index
    %c0_18 = arith.constant 0 : index
    %38 = vector.load %arg7[%c0_17, %c0_18] : memref<8x4xf32, #tpu.memory_space<vmem>>, vector<8x4xf32>
    %cst_19 = arith.constant dense<0.000000e+00> : vector<8x128xf32>
    %39 = tpu.matmul %38, %2, %cst_19 {dimension_numbers = #tpu.dot_dimension_numbers<[1], [0], [0], [1], [0, 0, 1, 1], [], []>} : vector<8x4xf32>, vector<4x128xf32>, vector<8x128xf32> -> vector<8x128xf32>
    %c0_20 = arith.constant 0 : index
    %c0_21 = arith.constant 0 : index
    %40 = vector.load %arg8[%c0_20, %c0_21] : memref<8x1xf32, #tpu.memory_space<vmem>>, vector<8x1xf32>
    %41 = vector.broadcast %40 : vector<8x1xf32> to vector<8x128xf32>
    %42 = arith.addf %39, %41 : vector<8x128xf32>
    %43 = arith.addf %37, %42 : vector<8x128xf32>
    %cst_22 = arith.constant 0.000000e+00 : f32
    %44 = vector.broadcast %cst_22 : f32 to vector<8x128xf32>
    %45 = arith.maximumf %43, %44 : vector<8x128xf32>
    %c0_23 = arith.constant 0 : index
    %c0_24 = arith.constant 0 : index
    %c0_25 = arith.constant 0 : index
    %46 = vector.load %arg9[%c0_23, %c0_24, %c0_25] : memref<1x8x128xf32, #tpu.memory_space<vmem>>, vector<1x8x128xf32>
    %47 = vector.shape_cast %46 : vector<1x8x128xf32> to vector<8x128xf32>
    %48 = vector.shape_cast %45 : vector<8x128xf32> to vector<1x8x128xf32>
    tpu.vector_store %arg9[%c0_23, %c0_24, %c0_25], %48 {strides = array<i32>} : memref<1x8x128xf32, #tpu.memory_space<vmem>>, vector<1x8x128xf32>,
    return
  }
  func.func @transform_0(%arg0: i32, %arg1: i32) -> (i32, i32, i32) {
    %c0_i32 = arith.constant 0 : i32
    %c0_i32_0 = arith.constant 0 : i32
    %c0_i32_1 = arith.constant 0 : i32
    return %arg0, %c0_i32, %c0_i32_0 : i32, i32, i32
  }
  func.func @transform_1(%arg0: i32, %arg1: i32) -> (i32, i32) {
    %c0_i32 = arith.constant 0 : i32
    %c0_i32_0 = arith.constant 0 : i32
    %c0_i32_1 = arith.constant 0 : i32
    return %c0_i32, %c0_i32_0 : i32, i32
  }
  func.func @transform_2(%arg0: i32, %arg1: i32) -> (i32, i32) {
    %c0_i32 = arith.constant 0 : i32
    %c0_i32_0 = arith.constant 0 : i32
    %c0_i32_1 = arith.constant 0 : i32
    return %c0_i32, %c0_i32_0 : i32, i32
  }
  func.func @transform_3(%arg0: i32, %arg1: i32) -> (i32, i32) {
    %c0_i32 = arith.constant 0 : i32
    %c0_i32_0 = arith.constant 0 : i32
    %c0_i32_1 = arith.constant 0 : i32
    return %c0_i32, %c0_i32_0 : i32, i32
  }
  func.func @transform_4(%arg0: i32, %arg1: i32) -> (i32, i32) {
    %c0_i32 = arith.constant 0 : i32
    %c0_i32_0 = arith.constant 0 : i32
    %c0_i32_1 = arith.constant 0 : i32
    return %c0_i32, %c0_i32_0 : i32, i32
  }
  func.func @transform_5(%arg0: i32, %arg1: i32) -> (i32, i32) {
    %c0_i32 = arith.constant 0 : i32
    %c0_i32_0 = arith.constant 0 : i32
    %c0_i32_1 = arith.constant 0 : i32
    return %c0_i32, %c0_i32_0 : i32, i32
  }
  func.func @transform_6(%arg0: i32, %arg1: i32) -> (i32, i32) {
    %c0_i32 = arith.constant 0 : i32
    %c0_i32_0 = arith.constant 0 : i32
    %c0_i32_1 = arith.constant 0 : i32
    return %c0_i32, %c0_i32_0 : i32, i32
  }
  func.func @transform_7(%arg0: i32, %arg1: i32) -> (i32, i32, i32) {
    %c0_i32 = arith.constant 0 : i32
    %c0_i32_0 = arith.constant 0 : i32
    return %arg0, %c0_i32, %arg1 : i32, i32, i32
  }
}

</mosaic_0001>

<bundles_post_ra>
// kernel: tpu_custom_call.1
= control target key start
LH: loop header
LB: loop body
LE: loop exit
PB: predicated region body
PF: predicated region fallthrough
CT: control target
= control target key end

     0   :  { %12 = vsyncpa [#allocation3], 0  ;;  %s1088_s0 = inlined_call_operand.vmem [shape: f32[2,4,256], index: 0, kind: input, shape index: {}]   ;;  %s1089_s1 = inlined_call_operand.vmem [shape: f32[8,24], index: 1, kind: input, shape index: {}]   ;;  %s1090_s2 = inlined_call_operand.vmem [shape: f32[8,1], index: 2, kind: input, shape index: {}]   ;;  %s1091_s3 = inlined_call_operand.vmem [shape: f32[8,24], index: 3, kind: input, shape index: {}]   ;;  %s1092_s4 = inlined_call_operand.vmem [shape: f32[8,1], index: 4, kind: input, shape index: {}]   ;;  %s1093_s5 = inlined_call_operand.vmem [shape: f32[8,4], index: 5, kind: input, shape index: {}]   ;;  %s1094_s6 = inlined_call_operand.vmem [shape: f32[8,1], index: 6, kind: input, shape index: {}]   ;;  %s1095_s7 = inlined_call_operand.hbm [shape: f32[2,8,128], index: 7, kind: output, shape index: {}]  }
   0x1   :  { %14 = vsyncpa [#allocation3 + $0x1], 0  ;;  %s937_s24 = smov 0   ;;  %s939_s25 = smov 0  }
   0x2   :  { %s941_s26 = smov 0   ;;  %s943_s27 = smov 0  }
   0x3   :  { %s945_s28 = smov 0   ;;  %s947_s29 = smov 0  }
   0x4 LB: > { %s710_s30 = sadd.s32 4294967295, %s888_s29   ;;  %s711_s8 = sadd.s32 4294967294, %s888_s29   ;;  %s888_s29 = sphi %s947_s29, %s20_s29   ;;  %s884_s28 = sphi %s945_s28, %s1102_s28   ;;  %s880_s27 = sphi %s943_s27, %s1101_s27   ;;  %s876_s26 = sphi %s941_s26, %s1100_s26   ;;  %s872_s25 = sphi %s939_s25, %s1099_s25   ;;  %s868_s24 = sphi %s937_s24, %s1098_s24  }
   0x5   : > { %s32_s9 = sadd.s32 1, %s884_s28  ;;  %s193_s10 = sadd.s32 1, %s876_s26 }
   0x6   : > { %p34_p0 = scmp.ge.s32.totalorder %s32_s9, 2  ;;  %p203_p1 = scmp.ne.s32.totalorder %s876_s26, %s872_s25 }
   0x7   : > { %p204_p2 = scmp.eq.s32.totalorder %s710_s30, 1  ;;  %p209_p3 = scmp.ne.s32.totalorder %s872_s25, %s868_s24 }
   0x8   : > { %s1104_s9 = smov (%p34_p0, %s32_s9), 0  ;;  %p210_p5 = scmp.eq.s32.totalorder %s711_s8, 1 }
   0x9   : > { %p977_p4 = por %p204_p2, %p203_p1  ;;  %s188_s12 = ssub.s32 %s884_s28, %s1104_s9 }
   0xa   : > { %p714_p6 = scmp.ge.s32.totalorder %s888_s29, 1  ;;  %p191_p7 = scmp.eq.s32.totalorder %s188_s12, 0 }
   0xb   : > { %p984_p8 = por %p210_p5, %p209_p3  ;;  %p254_p9 = scmp.lt.s32.totalorder %s888_s29, 3 }
   0xc   : > { %s990_s14 = scalar_select %p191_p7, %s876_s26, %s193_s10  }
   0xd   : > { %p255_p10 = pnand %p714_p6, %p254_p9 }
   0xe   : > { %p286_p11 = scmp.lt.s32.totalorder (!%p255_p10), %s880_s27, 1  ;;  %s890_s20 = smov (!%p255_p10), 127  }
   0xf   : > { %258 = sbr.rel (%p255_p10) target bundleno = 810 (0x32a), region = 48  ;;  %s891_s21 = smov (!%p255_p10), 126  }
  0x10   : > { %s894_s22 = smov (!%p255_p10), 4   ;;  %s724_s30 = sshll.u32 (!%p255_p10), %s880_s27, 7 }
  0x14   : > { %s287_s15 = scalar_select %p286_p11, %s880_s27, 1  ;;  %vm308_vm0 = vcmask 1031168   ;;  %vm312_vm1 = vcmask 1043456   ;;  %v892_v4 = vmov 0.0   ;;  %vm300_vm2 = vcmask 1039360   ;;  %v292_v16 = vld [vmem:[%s1090_s2] sm:$0xff] }
  0x15   : > { %421 = vmatprep.mubr.f32.mxu0 %v892_v4  ;;  %734 = vmatprep.subr.mxu1 %v892_v4  ;;  %v893_v9 = vmov 0   ;;  %vm343_vm3 = vcmask 31744   ;;  %v319_v25 = vld [vmem:[%s1089_s1] sm:$0xff]  ;;  %vm353_vm4 = vcmask 195584   ;;  %v430_v27 = vlaneseq }
  0x16   : > { %s727_s16 = sshll.u32 %s287_s15, 3  ;;  %809 = vset.pattern.permute.xlu0 %v893_v9  ;;  %810 = vset.pattern.permute.xlu1 %v893_v9  ;;  %vm895_vm6 = vmmov 0   ;;  %v542_v35 = vld [vmem:[%s1093_s5] sm:$0xff] }
  0x17   : > { %s290_s19 = scalar_lea.vmem %s1088_s0, %s727_s16  ;;  %v431_v29 = vand.u32 127, %v430_v27  ;;  %740 = vmatprep.mubr.msk.f32.mxu1 %vm895_vm6, %v892_v4  ;;  %v447_v37 = vld [vmem:[%s1092_s4] sm:$0xff]  ;;  %s640_s16 = scalar_lea.hbm %s1095_s7, %s724_s30 }
  0x18   : > { %v291_v0 = vld [vmem:[%s290_s19] sm:$0xff]  ;;  %s896_s19 = smov [#allocation2]  }
  0x19   : > { %296 = vrot.lane.b32.xlu1 %v291_v0, %s890_s20  ;;  %304 = vrot.lane.b32.xlu0 %v291_v0, %s891_s21  ;;  %v294_v1 = vcombine.high %v291_v0, %v291_v0  ;;  %v313_v15 = vsel %vm312_vm1, %v291_v0, 0.0  ;;  %vm434_vm5 = vcmp.ge.s32.totalorder %v431_v29, 2  ;;  %v543_v39 = vld [vmem:[%s1094_s6] sm:$0xff] }
  0x1a   : > { %v462_v46 = vld [vmem:[%s1091_s3] sm:$0xff] }
  0x1b   : > { %v314_v14 = vsel %vm312_vm1, %v294_v1, 0.0 }
  0x1d   : > { %298 = vrot.lane.b32.xlu1 %v294_v1, %s890_s20  ;;  %306 = vrot.lane.b32.xlu0 %v294_v1, %s891_s21 }
  0x8b   : > { %v297_v2 = vpop.permute.xlu1 %296  ;;  %v305_v3 = vpop.permute.xlu0 %304 }
  0x8f   : > { %v299_v5 = vpop.permute.xlu1 %298  ;;  %v307_v6 = vpop.permute.xlu0 %306 }
  0x90   : > { %v309_v7 = vsel %vm308_vm0, %v305_v3, %v307_v6  ;;  %v318_v8 = vsel %vm312_vm1, %v307_v6, 0.0  ;;  %v301_v11 = vsel %vm300_vm2, %v297_v2, %v299_v5  ;;  %v316_v12 = vsel %vm312_vm1, %v299_v5, 0.0 }
  0x91   : > { %341 = vrot.lane.b32.xlu1 %v318_v8, %s894_s22  ;;  %v317_v10 = vsel %vm312_vm1, %v309_v7, 0.0  ;;  %v315_v13 = vsel %vm312_vm1, %v301_v11, 0.0 }
  0x92   : > { %339 = vrot.lane.b32.xlu0 %v317_v10, %s894_s22 }
  0x95   : > { %337 = vrot.lane.b32.xlu1 %v316_v12, %s894_s22 }
  0x96   : > { %335 = vrot.lane.b32.xlu0 %v315_v13, %s894_s22 }
  0x99   : > { %333 = vrot.lane.b32.xlu1 %v314_v14, %s894_s22 }
  0x9a   : > { %331 = vrot.lane.b32.xlu0 %v313_v15, %s894_s22  ;;  %s283_s22 = sand.u32 1, %s872_s25  }
  0x9b   : > { %s715_s23 = sshll.u32 %s283_s22, 3  ;;  %s628_s17 = scalar_lea.sflag [#allocation3], %s283_s22 }
  0x9c   : > { %s285_s8 = scalar_lea.vmem [#allocation2], %s715_s23 }
  0x9d   : > { %s642_s10 = sshll.u32 %s285_s8, 4  ;;  %s643_s10 = int_to_ptr.vmem [resolvable:$true] %s642_s10 }
  0x9e   : > { %322 = vperm.xlu0 %809, %v292_v16   ;;  %s812_s18 = scalar_lea.vmem %s643_s10, 128 }
  0x9f   : > { %p813_p12 = scmp.ne.s32.totalorder %s643_s10, %s812_s18 }
  0xa1   : > { %p814_p13 = pnand %p813_p12, %p977_p4 }
  0xa3   : > { %p815_p0 = pneg %p814_p13 }
 0x103   : > { %v342_v17 = vpop.permute.xlu1 %341 }
 0x104   : > { %383 = vmatprep.subr.mxu0 %v342_v17  ;;  %v340_v18 = vpop.permute.xlu0 %339 }
 0x105   : > { %v346_v19 = vsel %vm343_vm3, %v340_v18, %v342_v17 }
 0x106   : > { %384 = vmatpush1.msra.mxu0 %v346_v19 }
 0x107   : > { %v338_v20 = vpop.permute.xlu1 %337 }
 0x108   : > { %385 = vmatprep.subr.mxu0 %v338_v20  ;;  %v336_v21 = vpop.permute.xlu0 %335 }
 0x109   : > { %v345_v22 = vsel %vm343_vm3, %v336_v21, %v338_v20 }
 0x10a   : > { %386 = vmatpush1.msra.mxu0 %v345_v22 }
 0x10b   : > { %v334_v23 = vpop.permute.xlu1 %333 }
 0x10c   : > { %v332_v24 = vpop.permute.xlu0 %331  ;;  %387 = vmatprep.subr.mxu0 %v334_v23 }
 0x10d   : > { %v344_v26 = vsel %vm343_vm3, %v332_v24, %v334_v23 }
 0x10e   : > { %388 = vmatpush1.msra.mxu0 %v344_v26 }
 0x10f   : > { %718 = vmatmul.mubr.msk.f32.vlgmr.msra.gmra.mxu0 %vm353_vm4, %v319_v25  ;;  %743 = vmatprep.subr.mxu0 %v892_v4 }
 0x110   : > { %744 = vmatpush3.msk.msra.mxu0 %vm312_vm1, %v294_v1  ;;  %745 = vmatprep.mubr.msk.f32.mxu0 %vm895_vm6, %v892_v4 }
 0x113   : > { %746 = vmatmul.mubr.msk.f32.vlgmr.msra.gmra.mxu0 %vm343_vm3, %v542_v35 }
 0x119   : > { %v323_v28 = vpop.permute.xlu0 %322 }
 0x1cf   : > { %v423_v30 = vpop.f32.mrf.mxu0 }
 0x1d0   : > { %v424_v31 = vadd.f32 %v423_v30, %v323_v28 }
 0x1d1   : > { %v425_v32 = vpop.f32.mrf.mxu0 }
 0x1d2   : > { %v428_v33 = vmax.f32 %v424_v31, 0.0  ;;  %v426_v34 = vadd.f32 %v425_v32, %v323_v28 }
 0x1d3   : > { %v620_v47 = vpop.f32.mrf.mxu0 }
 0x1d4   : > { %v445_v36 = vsel %vm434_vm5, %v428_v33, 0.0  ;;  %v429_v38 = vmax.f32 %v426_v34, 0.0 }
 0x1d5   : > { %450 = vrot.lane.b32.xlu0 %v445_v36, %s890_s20  ;;  %456 = vrot.lane.b32.xlu1 %v445_v36, %s891_s21  ;;  %v747_v48 = vpop.f32.mrf.mxu0 }
 0x1d9   : > { %465 = vperm.xlu0 %809, %v447_v37   ;;  %458 = vrot.lane.b32.xlu1 %v429_v38, %s891_s21  ;;  %s816_s21 = sshll.u32 %s896_s19, 4  ;;  %s817_s21 = int_to_ptr.vmem [resolvable:$false] %s816_s21 }
 0x1da   : > { %s818_s27 = scalar_lea.vmem %s817_s21, 256  ;;  %p819_p1 = scmp.lt.s32.totalorder %s643_s10, %s817_s21 }
 0x1db   : > { %p820_p2 = scmp.lt.s32.totalorder %s818_s27, %s812_s18 }
 0x1dd   : > { %452 = vrot.lane.b32.xlu1 %v429_v38, %s890_s20  ;;  %p821_p3 = por %p820_p2, %p819_p1 }
 0x1df   : > { %p822_p5 = pnand %p821_p3, %p815_p0 }
 0x1e1   : > { %546 = vperm.xlu1 %810, %v543_v39  }
 0x247   : > { %v457_v40 = vpop.permute.xlu1 %456  ;;  %v451_v43 = vpop.permute.xlu0 %450 }
 0x24b   : > { %v459_v41 = vpop.permute.xlu1 %458 }
 0x24c   : > { %v460_v42 = vsel %vm308_vm0, %v457_v40, %v459_v41 }
 0x24d   : > { %735 = vmatpush3.msra.mxu1 %v460_v42 }
 0x24e   : > { %736 = vmatprep.subr.mxu1 %v892_v4 }
 0x24f   : > { %v453_v44 = vpop.permute.xlu1 %452 }
 0x250   : > { %v454_v45 = vsel %vm300_vm2, %v451_v43, %v453_v44 }
 0x251   : > { %737 = vmatpush3.msra.mxu1 %v454_v45 }
 0x252   : > { %738 = vmatprep.subr.mxu1 %v892_v4 }
 0x253   : > { %739 = vmatpush3.msk.msra.mxu1 %vm434_vm5, %v428_v33 }
 0x254   : > { %741 = vmatmul.mubr.msk.f32.vlgmr.msra.gmra.mxu1 %vm353_vm4, %v462_v46  ;;  %v466_v50 = vpop.permute.xlu0 %465 }
 0x25c   : > { %v547_v49 = vpop.permute.xlu1 %546 }
 0x25d   : > { %v621_v53 = vadd.f32 %v620_v47, %v547_v49 }
 0x314   : > { %v537_v51 = vpop.f32.mrf.mxu1 }
 0x315   : > { %v538_v52 = vadd.f32 %v537_v51, %v466_v50 }
 0x316   : > { %v742_v54 = vpop.f32.mrf.mxu1 }
 0x317   : > { %v541_v55 = vmax.f32 %v538_v52, 0.0 }
 0x319   : > { %v624_v56 = vadd.f32 %v621_v53, %v541_v55 }
 0x31b   : > { %v625_v57 = vmax.f32 %v624_v56, 0.0 }
 0x31d   : > { %626 = vst [vmem:[%s285_s8] sm:$0xff] %v625_v57 }
 0x31e   : > { %825 = shalt.err (!%p822_p5)
}
 0x31f   : > { %s826_s20 = scalar_lea.hbm %s640_s16, 128  ;;  %s830_s30 = scalar_lea.hbm %s1095_s7, 256 }
 0x320   : > { %p827_p6 = scmp.ne.s32.totalorder %s640_s16, %s826_s20  ;;  %p831_p10 = scmp.lt.s32.totalorder %s640_s16, %s1095_s7 }
 0x321   : > { %p832_p11 = scmp.lt.s32.totalorder %s830_s30, %s826_s20 }
 0x322   : > { %p828_p7 = pnand %p827_p6, %p977_p4 }
 0x323   : > { %p833_p12 = por %p832_p11, %p831_p10 }
 0x324   : > { %p829_p9 = pneg %p828_p7 }
 0x326   : > { %p834_p13 = pnand %p833_p12, %p829_p9 }
 0x328   : > { %837 = shalt.err (!%p834_p13)
}
 0x329   : > { %748 = dma.vmem_to_hbm [thread:$0]  (%p977_p4), %s643_s10, 128, %s640_s16, %s628_s17  }
 0x32a PF: > { %p754_p0 = scmp.ge.s32.totalorder %s888_s29, 2  ;;  %s654_s15 = sand.u32 1, %s868_s24  }
 0x32b   : > { %s655_s18 = scalar_lea.sflag [#allocation3], %s654_s15 }
 0x32c   : > { %p751_p1 = pnand %p754_p0, %p984_p8 }
 0x32e   : > { %p752_p2 = pneg %p751_p1 }
 0x330   : > { %863 = dma.done.wait (%p752_p2), %s655_s18, 128  }
 0x331   : > { %865 = vsyncadd (%p752_p2), %s655_s18, 4294967168  ;;  %s20_s29 = sadd.s32 1, %s888_s29   ;;  %s1098_s24 = smov %s872_s25 }
 0x332   : > { %p17_p3 = scmp.ge.s32.totalorder %s20_s29, 4   ;;  %s1099_s25 = smov %s876_s26 }
 0x333   : > { %s1100_s26 = smov %s990_s14  ;;  %s1101_s27 = smov %s884_s28 }
 0x334   : > { %s1102_s28 = smov %s1104_s9  ;;  %19 = sbr.rel (!%p17_p3) target bundleno = 4 (0x4), region = 83 }
 0x339   :  { %660 = vsyncpa [#allocation3], 1 }
 0x33a   :  { %662 = vsyncpa [#allocation3 + $0x1], 1 }

</bundles_post_ra>
